<compile_context>
chip_gen: v7x
topology: tpu7x:2x2x1
jax: 0.10.0
libtpu: 0.0.40
codegen_flags: <defaults>
</compile_context>

<pallas_src>
import math

import jax
import jax.numpy as jnp
from jax.experimental import pallas as pl
from jax.experimental.pallas import tpu as pltpu

IN_FEATURES = 28 * 28   # 784
OUT_FEATURES = 128
LANE_PADDED_K = 896     # 784 rounds up to 7*128 lanes in VMEM


def _adapter_kernel(x_ref, w_ref, b_ref, o_ref):
    # x_ref: (TM, 784) bf16  w_ref: (784, 128) bf16  b_ref: (1, 128) f32
    # o_ref: (TM, 128) f32
    acc = jnp.dot(x_ref[...], w_ref[...], preferred_element_type=jnp.float32)
    acc = acc + b_ref[...]                      # broadcast (1,128) over rows
    o_ref[...] = jnp.maximum(acc, 0.0).astype(o_ref.dtype)


def _pick_batch_tile(batch):
    """Balanced batch tiles: multiple of 16 (bf16 sublanes), cap 2048 rows.

    For batch > 16 we force an even number (>= 2) of tiles so v7x's megacore
    sharding of the 'parallel' grid axis keeps both TensorCores busy and
    balanced; on single-TC chips the extra grid step costs ~0.35 us (noise).
    """
    if batch <= 16:
        return batch
    cap = 2048
    n_tiles = max(2, math.ceil(batch / cap))
    if n_tiles % 2:                 # even tile count -> balanced across 2 TCs
        n_tiles += 1
    tm = 16 * math.ceil(math.ceil(batch / n_tiles) / 16)
    return min(tm, cap)


def image_adapter_forward(x_nchw, weight_t, bias):
    """x_nchw: (B, C, H, W) with C*H*W == 784; weight_t: (784, 128); bias: (128,)."""
    B = x_nchw.shape[0]
    x_flat = x_nchw.reshape(B, -1)              # nn.Flatten(), row-major like torch
    assert x_flat.shape[1] == IN_FEATURES

    # bf16 matmul inputs, f32 accumulate/bias/output (see header note).
    x_bf16 = x_flat.astype(jnp.bfloat16)
    w_bf16 = weight_t.astype(jnp.bfloat16)
    b2d = bias.astype(jnp.float32).reshape(1, OUT_FEATURES)

    tm = _pick_batch_tile(B)
    grid = (pl.cdiv(B, tm),)                    # partial last tile masked by Pallas

    # VMEM budget (bytes), lane-padding aware:
    #   x tile : double-buffered, bf16, K padded 784 -> 896 lanes
    #   o tile : double-buffered, f32, N = 128 (full-lane unmasked stores)
    #   weight : single buffer (Buffered(1)), bf16
    #   bias   : one (8,128)-padded f32 tile
    x_bytes = 2 * tm * LANE_PADDED_K * 2
    o_bytes = 2 * tm * OUT_FEATURES * 4
    w_bytes = IN_FEATURES * OUT_FEATURES * 2
    b_bytes = 8 * OUT_FEATURES * 4
    vmem_limit = x_bytes + o_bytes + w_bytes + b_bytes + (2 << 20)   # +2 MiB slack
    vmem_limit = min(max(vmem_limit, 16 << 20), 64 << 20)            # v7x ceiling

    cost = pl.CostEstimate(
        flops=2 * B * IN_FEATURES * OUT_FEATURES,
        transcendentals=0,
        bytes_accessed=(B * IN_FEATURES * 2                  # x (bf16)
                        + IN_FEATURES * OUT_FEATURES * 2     # weight (bf16)
                        + B * OUT_FEATURES * 4),             # out (f32)
    )

    return pl.pallas_call(
        _adapter_kernel,
        out_shape=jax.ShapeDtypeStruct((B, OUT_FEATURES), jnp.float32),
        grid=grid,
        in_specs=[
            # Streamed, double-buffered activation tiles.
            pl.BlockSpec((tm, IN_FEATURES), lambda i: (i, 0)),
            # Constant index_map -> fetched once, single buffer (no dead copy).
            pl.BlockSpec((IN_FEATURES, OUT_FEATURES), lambda i: (0, 0),
                         pipeline_mode=pl.Buffered(1)),
            pl.BlockSpec((1, OUT_FEATURES), lambda i: (0, 0),
                         pipeline_mode=pl.Buffered(1)),
        ],
        out_specs=pl.BlockSpec((tm, OUT_FEATURES), lambda i: (i, 0)),
        compiler_params=pltpu.CompilerParams(
            dimension_semantics=("parallel",),   # shard batch tiles across TCs (v7x)
            vmem_limit_bytes=vmem_limit,
        ),
        cost_estimate=cost,
    )(x_bf16, w_bf16, b2d)


if __name__ == "__main__":
    key = jax.random.PRNGKey(0)
    k_x, k_w, k_b = jax.random.split(key, 3)

    # Deterministic synthetic parameters (shapes from nn.Linear(784, 128)).
    # Torch stores weight as (128, 784); we keep its transpose (784, 128).
    bound = 1.0 / (IN_FEATURES ** 0.5)
    weight_t = jax.random.uniform(
        k_w, (IN_FEATURES, OUT_FEATURES), jnp.float32, minval=-bound, maxval=bound
    )
    bias = jax.random.uniform(
        k_b, (OUT_FEATURES,), jnp.float32, minval=-bound, maxval=bound
    )

    # Example input consistent with a 28x28 single-channel image batch (NCHW).
    x = jax.random.normal(k_x, (2, 1, 28, 28), jnp.float32)

    out = jax.block_until_ready(image_adapter_forward(x, weight_t, bias))

    # Sanity check against plain-JAX f32 reference (loose tol: bf16 matmul inputs).
    ref = jnp.maximum(x.reshape(2, -1) @ weight_t + bias, 0.0)
    assert out.shape == (2, OUT_FEATURES)
    assert out.dtype == jnp.float32
    assert jnp.allclose(out, ref, atol=1e-2, rtol=1e-2)

    print("KERNEL_OK")
</pallas_src>

<mosaic_0001>
module attributes {stable_mosaic.version = 11 : i64} {
  func.func @_adapter_kernel(%arg0: i32, %arg1: memref<2x784xbf16, #tpu.memory_space<vmem>>, %arg2: memref<784x128xbf16, #tpu.memory_space<vmem>>, %arg3: memref<1x128xf32, #tpu.memory_space<vmem>>, %arg4: memref<2x128xf32, #tpu.memory_space<vmem>>) attributes {dimension_semantics = [#tpu.dimension_semantics<parallel>], iteration_bounds = array<i64: 1>, scalar_prefetch = 0 : i64, scratch_operands = 0 : i64, tpu.core_type = #tpu.core_type<tc>, window_params = [{transform_indices = @transform_0, window_bounds = array<i64: 2, 784>}, {pipeline_mode = #tpu.pipeline_mode<synchronous>, transform_indices = @transform_1, window_bounds = array<i64: 784, 128>}, {pipeline_mode = #tpu.pipeline_mode<synchronous>, transform_indices = @transform_2, window_bounds = array<i64: 1, 128>}, {transform_indices = @transform_3, window_bounds = array<i64: 2, 128>}]} {
    %c0 = arith.constant 0 : index
    %c0_0 = arith.constant 0 : index
    %0 = vector.load %arg1[%c0, %c0_0] : memref<2x784xbf16, #tpu.memory_space<vmem>>, vector<2x784xbf16>
    %c0_1 = arith.constant 0 : index
    %c0_2 = arith.constant 0 : index
    %1 = vector.load %arg2[%c0_1, %c0_2] : memref<784x128xbf16, #tpu.memory_space<vmem>>, vector<784x128xbf16>
    %cst = arith.constant dense<0.000000e+00> : vector<2x128xf32>
    %2 = tpu.matmul %0, %1, %cst {dimension_numbers = #tpu.dot_dimension_numbers<[1], [0], [0], [1], [0, 0, 1, 1], [], []>} : vector<2x784xbf16>, vector<784x128xbf16>, vector<2x128xf32> -> vector<2x128xf32>
    %c0_3 = arith.constant 0 : index
    %c0_4 = arith.constant 0 : index
    %3 = vector.load %arg3[%c0_3, %c0_4] : memref<1x128xf32, #tpu.memory_space<vmem>>, vector<1x128xf32>
    %4 = vector.broadcast %3 : vector<1x128xf32> to vector<2x128xf32>
    %5 = arith.addf %2, %4 : vector<2x128xf32>
    %cst_5 = arith.constant 0.000000e+00 : f32
    %6 = vector.broadcast %cst_5 : f32 to vector<2x128xf32>
    %7 = arith.maximumf %5, %6 : vector<2x128xf32>
    %c0_6 = arith.constant 0 : index
    %c0_7 = arith.constant 0 : index
    %8 = vector.load %arg4[%c0_6, %c0_7] : memref<2x128xf32, #tpu.memory_space<vmem>>, vector<2x128xf32>
    tpu.vector_store %arg4[%c0_6, %c0_7], %7 {strides = array<i32>} : memref<2x128xf32, #tpu.memory_space<vmem>>, vector<2x128xf32>,
    return
  }
  func.func @transform_0(%arg0: i32) -> (i32, i32) {
    %c0_i32 = arith.constant 0 : i32
    %c0_i32_0 = arith.constant 0 : i32
    return %arg0, %c0_i32 : i32, i32
  }
  func.func @transform_1(%arg0: i32) -> (i32, i32) {
    %c0_i32 = arith.constant 0 : i32
    %c0_i32_0 = arith.constant 0 : i32
    %c0_i32_1 = arith.constant 0 : i32
    return %c0_i32, %c0_i32_0 : i32, i32
  }
  func.func @transform_2(%arg0: i32) -> (i32, i32) {
    %c0_i32 = arith.constant 0 : i32
    %c0_i32_0 = arith.constant 0 : i32
    %c0_i32_1 = arith.constant 0 : i32
    return %c0_i32, %c0_i32_0 : i32, i32
  }
  func.func @transform_3(%arg0: i32) -> (i32, i32) {
    %c0_i32 = arith.constant 0 : i32
    %c0_i32_0 = arith.constant 0 : i32
    return %arg0, %c0_i32 : i32, i32
  }
}

</mosaic_0001>

<bundles_post_ra>
// kernel: tpu_custom_call.1
= control target key start
LH: loop header
LB: loop body
LE: loop exit
PB: predicated region body
PF: predicated region fallthrough
CT: control target
= control target key end

     0   :  { %8 = vsyncpa [#allocation3], 0  ;;  %s1008_s0 = inlined_call_operand.hbm [shape: bf16[2,784], index: 0, kind: input, shape index: {}]   ;;  %s1009_s1 = inlined_call_operand.hbm [shape: bf16[784,128], index: 1, kind: input, shape index: {}]   ;;  %s1010_s2 = inlined_call_operand.vmem [shape: f32[1,128], index: 2, kind: input, shape index: {}]   ;;  %s1011_s3 = inlined_call_operand.hbm [shape: f32[2,128], index: 3, kind: output, shape index: {}]  }
   0x1   :  { %9 = vsyncpa [#allocation6], 0 }
   0x2   :  { %10 = vsyncpa [#allocation4], 0  ;;  %s934_s12 = smov [#allocation2]   ;;  %s935_s14 = smov [#allocation5]  }
   0x3   :  { %s17_s13 = sshll.u32 %s934_s12, 4  ;;  %s26_s15 = sshll.u32 %s935_s14, 4  ;;  %s18_s13 = int_to_ptr.vmem [resolvable:$true] %s17_s13  ;;  %s962_s15 = int_to_ptr.vmem [resolvable:$true] %s26_s15 }
   0x4   :  { %s862_s18 = scalar_lea.hbm %s1008_s0, 112 }
   0x5   :  { %p863_p0 = scmp.ne.s32.totalorder %s1008_s0, %s862_s18  ;;  %p866_p1 = scmp.lt.u32.totalorder %s862_s18, %s1008_s0 }
   0x7   :  { %p868_p2 = pnand %p866_p1, %p863_p0 }
   0x9   :  { %871 = shalt.err (!%p868_p2)
}
   0xa   :  { %s872_s23 = scalar_lea.vmem %s18_s13, 112  ;;  %s876_s24 = scalar_lea.vmem %s18_s13, 128 }
   0xb   :  { %p873_p3 = scmp.ne.s32.totalorder %s18_s13, %s872_s23  ;;  %p877_p4 = scmp.lt.s32.totalorder %s18_s13, %s18_s13 }
   0xc   :  { %p878_p5 = scmp.lt.s32.totalorder %s876_s24, %s872_s23 }
   0xe   :  { %p879_p6 = por %p878_p5, %p877_p4 }
  0x10   :  { %p880_p7 = pnand %p879_p6, %p873_p3 }
  0x12   :  { %883 = shalt.err (!%p880_p7)
}
  0x13   :  { %20 = dma.hbm_to_vmem [thread:$0]  %s1008_s0, 112, %s18_s13, [#allocation3]  }
  0x14   :  { %s884_s29 = scalar_lea.hbm %s1009_s1, 6272 }
  0x15   :  { %p885_p8 = scmp.ne.s32.totalorder %s1009_s1, %s884_s29  ;;  %p888_p9 = scmp.lt.u32.totalorder %s884_s29, %s1009_s1 }
  0x17   :  { %p890_p10 = pnand %p888_p9, %p885_p8 }
  0x19   :  { %893 = shalt.err (!%p890_p10)
}
  0x1a   :  { %s894_s7 = scalar_lea.vmem %s962_s15, 6272  ;;  %p899_p12 = scmp.lt.s32.totalorder %s962_s15, %s962_s15 }
  0x1b   :  { %p895_p11 = scmp.ne.s32.totalorder %s962_s15, %s894_s7  ;;  %p900_p13 = scmp.lt.s32.totalorder %s894_s7, %s894_s7 }
  0x1d   :  { %p901_p0 = por %p900_p13, %p899_p12 }
  0x1f   :  { %p902_p1 = pnand %p901_p0, %p895_p11 }
  0x21   :  { %905 = shalt.err (!%p902_p1)
}
  0x22   :  { %s936_s0 = smov 64   ;;  %s937_s8 = smov 4  }
  0x23   :  { %32 = dma.hbm_to_vmem [thread:$0]  %s1009_s1, 6272, %s962_s15, [#allocation6], %s936_s0, %s936_s0, %s937_s8  }
  0x24   :  { %928 = dma.done.wait [#allocation3], 112  }
  0x25   :  { %929 = vsyncadd [#allocation3], 4294967184 }
  0x26   :  { %930 = dma.done.wait [#allocation6], 6272  }
  0x27   :  { %931 = vsyncadd [#allocation6], 4294961024  ;;  %v812_v0 = vld [vmem:[#allocation5 + $0x40] sm:$0xff]   ;;  %v816_v4 = vld [vmem:[#allocation5 + $0x48] sm:$0xff]   ;;  %v938_v21 = vmov 1966171168   ;;  %v153_v23 = vlaneseq }
  0x28   :  { %v813_v1 = vld [vmem:[#allocation5] sm:$0xff]   ;;  %730 = vmatprep.subr.bf16.mxu0 %v812_v0  ;;  %v817_v5 = vld [vmem:[#allocation5 + $0x8] sm:$0xff]   ;;  %v820_v8 = vld [vmem:[#allocation5 + $0x50] sm:$0xff]   ;;  %v151_v22 = vunpack.c.l.s4 %v938_v21  ;;  %v939_v45 = vmov 0.0   ;;  %vm940_vm0 = vmmov 0   ;;  %vm497_vm1 = vcmask 130048  }
  0x29   :  { %v814_v2 = vld [vmem:[#allocation5 + $0xc0] sm:$0xff]   ;;  %731 = vmatpush3.bf16.msra.mxu0 %v813_v1  ;;  %v818_v6 = vld [vmem:[#allocation5 + $0xc8] sm:$0xff]   ;;  %v821_v9 = vld [vmem:[#allocation5 + $0x10] sm:$0xff]   ;;  %v154_v29 = vshrl.u32 %v153_v23, 7 }
  0x2a   :  { %v815_v3 = vld [vmem:[#allocation5 + $0x80] sm:$0xff]   ;;  %752 = vmatprep.subr.bf16.mxu1 %v814_v2  ;;  %732 = vmatprep.subr.bf16.mxu0 %v816_v4  ;;  %v819_v7 = vld [vmem:[#allocation5 + $0x88] sm:$0xff]   ;;  %v822_v10 = vld [vmem:[#allocation5 + $0xd0] sm:$0xff]   ;;  %v152_v28 = vunpack.c.0.s8 %v151_v22 }
  0x2b   :  { %753 = vmatpush3.bf16.msra.mxu1 %v815_v3  ;;  %v823_v11 = vld [vmem:[#allocation5 + $0x90] sm:$0xff]   ;;  %v824_v12 = vld [vmem:[#allocation5 + $0x58] sm:$0xff]   ;;  %v828_v16 = vld [vmem:[#allocation5 + $0x60] sm:$0xff]  }
  0x2c   :  { %754 = vmatprep.subr.bf16.mxu1 %v818_v6  ;;  %v825_v13 = vld [vmem:[#allocation5 + $0x18] sm:$0xff]   ;;  %v829_v17 = vld [vmem:[#allocation5 + $0x20] sm:$0xff]   ;;  %v832_v20 = vld [vmem:[#allocation5 + $0x68] sm:$0xff]   ;;  %v155_v34 = vsub.s32 %v152_v28, %v154_v29 }
  0x2d   :  { %733 = vmatpush3.bf16.msra.mxu0 %v817_v5  ;;  %v826_v14 = vld [vmem:[#allocation5 + $0xd8] sm:$0xff]   ;;  %v830_v18 = vld [vmem:[#allocation5 + $0xe0] sm:$0xff]   ;;  %v833_v24 = vld [vmem:[#allocation5 + $0x28] sm:$0xff]  }
  0x2e   :  { %734 = vmatprep.subr.bf16.mxu0 %v820_v8  ;;  %v827_v15 = vld [vmem:[#allocation5 + $0x98] sm:$0xff]   ;;  %v831_v19 = vld [vmem:[#allocation5 + $0xa0] sm:$0xff]   ;;  %v834_v25 = vld [vmem:[#allocation5 + $0xe8] sm:$0xff]  }
  0x2f   :  { %755 = vmatpush3.bf16.msra.mxu1 %v819_v7  ;;  %v835_v26 = vld [vmem:[#allocation5 + $0xa8] sm:$0xff]   ;;  %v836_v27 = vld [vmem:[#allocation5 + $0x70] sm:$0xff]   ;;  %v840_v33 = vld [vmem:[#allocation5 + $0x78] sm:$0xff]  }
  0x30   :  { %756 = vmatprep.subr.bf16.mxu1 %v822_v10  ;;  %v837_v30 = vld [vmem:[#allocation5 + $0x30] sm:$0xff]   ;;  %v841_v35 = vld [vmem:[#allocation5 + $0x38] sm:$0xff]   ;;  %v845_v41 = vld [vmem:[#allocation5 + $0x140] sm:$0xff]  }
  0x31   :  { %735 = vmatpush3.bf16.msra.mxu0 %v821_v9  ;;  %v838_v31 = vld [vmem:[#allocation5 + $0xf0] sm:$0xff]   ;;  %v842_v36 = vld [vmem:[#allocation5 + $0xf8] sm:$0xff]   ;;  %v846_v47 = vld [vmem:[#allocation5 + $0x100] sm:$0xff]  }
  0x32   :  { %736 = vmatprep.subr.bf16.mxu0 %v824_v12  ;;  %v839_v32 = vld [vmem:[#allocation5 + $0xb0] sm:$0xff]   ;;  %v42_v37 = vld [vmem:[#allocation2] sm:$0x7f]  ;;  %v847_v50 = vld [vmem:[#allocation5 + $0x148] sm:$0xff]  }
  0x33   :  { %757 = vmatpush3.bf16.msra.mxu1 %v823_v11  ;;  %v149_v38 = vcombine.high %v42_v37, %v42_v37  ;;  %v156_v39 = vrot.slane %v42_v37, %v155_v34  ;;  %v844_v40 = vld [vmem:[#allocation5 + $0xb8] sm:$0xff]   ;;  %v848_v53 = vld [vmem:[#allocation5 + $0x108] sm:$0xff]   ;;  %v849_v54 = vld [vmem:[#allocation5 + $0x150] sm:$0xff]  }
  0x34   :  { %758 = vmatprep.subr.bf16.mxu1 %v826_v14  ;;  %v850_v55 = vld [vmem:[#allocation5 + $0x110] sm:$0xff]   ;;  %v851_v56 = vld [vmem:[#allocation5 + $0x158] sm:$0xff]   ;;  %v853_v59 = vld [vmem:[#allocation5 + $0x160] sm:$0xff]  }
  0x35   :  { %737 = vmatpush3.bf16.msra.mxu0 %v825_v13  ;;  %v164_v42 = vcombine.high %v156_v39, %v156_v39  ;;  %v172_v43 = vrot.slane %v156_v39, %v155_v34  ;;  %v163_v44 = vrot.slane %v149_v38, %v155_v34  ;;  %v852_v58 = vld [vmem:[#allocation5 + $0x118] sm:$0xff]   ;;  %v861_v60 = vld [vmem:[#allocation5 + $0x180] sm:$0xff]   ;;  %v855_v63 = vld [vmem:[#allocation5 + $0x168] sm:$0xff]  }
  0x36   :  { %738 = vmatprep.subr.bf16.mxu0 %v828_v16  ;;  %v854_v62 = vld [vmem:[#allocation5 + $0x120] sm:$0xff]   ;;  %v856_v0 = vld [vmem:[#allocation5 + $0x128] sm:$0xff]   ;;  %v857_v1 = vld [vmem:[#allocation5 + $0x170] sm:$0xff]  }
  0x37   :  { %759 = vmatpush3.bf16.msra.mxu1 %v827_v15  ;;  %v186_v46 = vrot.slane %v164_v42, %v155_v34  ;;  %v165_v48 = vcombine.high %v163_v44, %v163_v44  ;;  %v194_v49 = vcombine.high %v172_v43, %v172_v43  ;;  %v179_v57 = vrot.slane %v163_v44, %v155_v34  ;;  %v858_v2 = vld [vmem:[#allocation5 + $0x130] sm:$0xff]   ;;  %v859_v3 = vld [vmem:[#allocation5 + $0x178] sm:$0xff]  }
  0x38   :  { %760 = vmatprep.subr.bf16.mxu1 %v830_v18  ;;  %v860_v4 = vld [vmem:[#allocation5 + $0x138] sm:$0xff]  }
  0x39   :  { %739 = vmatpush3.bf16.msra.mxu0 %v829_v17  ;;  %533 = vmatprep.mubr.bf16.mxu0 %v186_v46  ;;  %v196_v51 = vcombine.high %v186_v46, %v186_v46  ;;  %v193_v52 = vrot.slane %v165_v48, %v155_v34  ;;  %v195_v61 = vcombine.high %v179_v57, %v179_v57  ;;  %v679_v6 = vld [vmem:[%s1010_s2] ss:$0 sm:$0xff]  ;;  %s941_s2 = smov [#allocation7]  }
  0x3a   :  { %740 = vmatprep.subr.bf16.mxu0 %v832_v20  ;;  %s669_s12 = sshll.u32 %s941_s2, 4  ;;  %s670_s12 = int_to_ptr.vmem [resolvable:$true] %s669_s12 }
  0x3b   :  { %761 = vmatpush3.bf16.msra.mxu1 %v831_v19  ;;  %573 = vmatprep.mubr.bf16.mxu1 %v196_v51  ;;  %s906_s13 = scalar_lea.vmem %s670_s12, 32  ;;  %p911_p3 = scmp.lt.s32.totalorder %s670_s12, %s670_s12 }
  0x3c   :  { %762 = vmatprep.subr.bf16.mxu1 %v834_v25  ;;  %p907_p2 = scmp.ne.s32.totalorder %s670_s12, %s906_s13  ;;  %p912_p4 = scmp.lt.s32.totalorder %s906_s13, %s906_s13 }
  0x3d   :  { %741 = vmatpush3.bf16.msra.mxu0 %v833_v24 }
  0x3e   :  { %742 = vmatprep.subr.bf16.mxu0 %v836_v27  ;;  %p913_p5 = por %p912_p4, %p911_p3 }
  0x3f   :  { %763 = vmatpush3.bf16.msra.mxu1 %v835_v26 }
  0x40   :  { %764 = vmatprep.subr.bf16.mxu1 %v838_v31  ;;  %p914_p6 = pnand %p913_p5, %p907_p2 }
  0x41   :  { %743 = vmatpush3.bf16.msra.mxu0 %v837_v30 }
  0x42   :  { %744 = vmatprep.subr.bf16.mxu0 %v840_v33 }
  0x43   :  { %765 = vmatpush3.bf16.msra.mxu1 %v839_v32 }
  0x44   :  { %766 = vmatprep.subr.bf16.mxu1 %v842_v36 }
  0x45   :  { %745 = vmatpush3.bf16.msra.mxu0 %v841_v35 }
  0x46   :  { %774 = vmatprep.subr.bf16.mxu0 %v845_v41 }
  0x47   :  { %767 = vmatpush3.bf16.msra.mxu1 %v844_v40 }
  0x48   :  { %798 = vmatprep.subr.bf16.mxu1 %v939_v45  ;;  %534 = vmatmul.mubr.bf16.vlgmr.msra.gmra.mrb[0].mxu0 %v172_v43 }
  0x49   :  { %775 = vmatpush3.bf16.msra.mxu0 %v846_v47  ;;  %613 = vmatprep.mubr.bf16.mxu0 %v193_v52 }
  0x4a   :  { %574 = vmatmul.mubr.bf16.vlgmr.msra.gmra.mrb[0].mxu1 %v194_v49  ;;  %776 = vmatprep.subr.bf16.mxu0 %v847_v50 }
  0x4b   :  { %800 = vmatprep.mubr.msk.bf16.mxu1 %vm940_vm0, %v939_v45  ;;  %799 = vmatpush3.bf16.msra.mxu1 %v861_v60 }
  0x4d   :  { %777 = vmatpush3.bf16.msra.mxu0 %v848_v53 }
  0x4e   :  { %778 = vmatprep.subr.bf16.mxu0 %v849_v54 }
  0x51   :  { %779 = vmatpush3.bf16.msra.mxu0 %v850_v55 }
  0x52   :  { %780 = vmatprep.subr.bf16.mxu0 %v851_v56  ;;  %801 = vmatmul.mubr.msk.bf16.vlgmr.msra.gmra.mrb[4].mxu1 %vm497_vm1, %v195_v61 }
  0x55   :  { %781 = vmatpush3.bf16.msra.mxu0 %v852_v58 }
  0x56   :  { %782 = vmatprep.subr.bf16.mxu0 %v853_v59 }
  0x59   :  { %783 = vmatpush3.bf16.msra.mxu0 %v854_v62 }
  0x5a   :  { %784 = vmatprep.subr.bf16.mxu0 %v855_v63 }
  0x5d   :  { %785 = vmatpush3.bf16.msra.mxu0 %v856_v0 }
  0x5e   :  { %786 = vmatprep.subr.bf16.mxu0 %v857_v1 }
  0x61   :  { %787 = vmatpush3.bf16.msra.mxu0 %v858_v2 }
  0x62   :  { %788 = vmatprep.subr.bf16.mxu0 %v859_v3 }
  0x65   :  { %789 = vmatpush3.bf16.msra.mxu0 %v860_v4 }
  0x68   :  { %614 = vmatmul.mubr.bf16.vlgmr.msra.gmra.mrb[4].mxu0 %v179_v57 }
 0x11b   :  { %v746_v5 = vpop.f32.mrb[0].mxu0 }
 0x11c   :  { %v747_v7 = vpop.f32.mrb[1].mxu0 }
 0x11d   :  { %v748_v8 = vadd.f32 %v747_v7, %v746_v5  ;;  %v749_v9 = vpop.f32.mrb[2].mxu0  ;;  %v768_v10 = vpop.f32.mrb[0].mxu1 }
 0x11e   :  { %v750_v11 = vpop.f32.mrb[3].mxu0  ;;  %v769_v12 = vpop.f32.mrb[1].mxu1 }
 0x11f   :  { %v536_v13 = vadd.f32 %v748_v8, %v679_v6  ;;  %v770_v14 = vadd.f32 %v769_v12, %v768_v10  ;;  %v771_v15 = vpop.f32.mrb[2].mxu1 }
 0x120   :  { %v772_v16 = vpop.f32.mrb[3].mxu1 }
 0x121   :  { %v576_v17 = vadd.f32 %v770_v14, %v536_v13 }
 0x125   :  { %v655_v18 = vpop.f32.mrb[4].mxu1 }
 0x126   :  { %v802_v19 = vpop.f32.mrb[5].mxu1 }
 0x127   :  { %v658_v20 = vpop.f32.mrb[6].mxu1 }
 0x128   :  { %v803_v21 = vpop.f32.mrb[7].mxu1 }
 0x13b   :  { %v790_v22 = vpop.f32.mrb[4].mxu0 }
 0x13c   :  { %v791_v23 = vpop.f32.mrb[5].mxu0 }
 0x13d   :  { %v792_v24 = vadd.f32 %v791_v23, %v790_v22  ;;  %v793_v25 = vpop.f32.mrb[6].mxu0 }
 0x13e   :  { %v794_v26 = vpop.f32.mrb[7].mxu0 }
 0x13f   :  { %v616_v27 = vadd.f32 %v792_v24, %v576_v17 }
 0x141   :  { %v656_v28 = vadd.f32 %v655_v18, %v616_v27 }
 0x143   :  { %v661_v29 = vmax.f32 %v656_v28, 0.0 }
 0x145   :  { %662 = vst [vmem:[#allocation7] sm:$0x3] %v661_v29 }
 0x146   :  { %917 = shalt.err (!%p914_p6)
}
 0x147   :  { %s918_s16 = scalar_lea.hbm %s1011_s3, 32 }
 0x148   :  { %p919_p7 = scmp.ne.s32.totalorder %s1011_s3, %s918_s16  ;;  %p922_p8 = scmp.lt.u32.totalorder %s918_s16, %s1011_s3 }
 0x14a   :  { %p924_p9 = pnand %p922_p8, %p919_p7 }
 0x14c   :  { %927 = shalt.err (!%p924_p9)
}
 0x14d   :  { %672 = dma.vmem_to_hbm [thread:$0]  %s670_s12, 32, %s1011_s3, [#allocation4]  }
 0x14e   :  { %932 = dma.done.wait [#allocation4], 32  }
 0x14f   :  { %933 = vsyncadd [#allocation4], 4294967264 }
 0x150   :  { %676 = vsyncpa [#allocation3], 1 }
 0x151   :  { %677 = vsyncpa [#allocation6], 1 }
 0x152   :  { %678 = vsyncpa [#allocation4], 1 }

</bundles_post_ra>
